<compile_context>
chip_gen: v5e
topology: v5e:2x2
jax: 0.10.0
libtpu: 0.0.40
codegen_flags: <defaults>
</compile_context>

<pallas_src>
import functools

import jax
import jax.numpy as jnp
from jax.experimental import pallas as pl
from jax.experimental.pallas import tpu as pltpu


def _round_up(n: int, m: int) -> int:
    return ((n + m - 1) // m) * m


def _greeting_kernel(x_ref, w1_ref, b1_ref, w2_ref, b2_ref, o_ref, acc_ref, *,
                     lane_major_out: bool):
    """One (batch-tile, K-tile) grid step.  Axis 1 is the fc1 contraction."""
    k = pl.program_id(1)

    @pl.when(k == 0)
    def _init():
        acc_ref[...] = jnp.zeros_like(acc_ref)

    # fc1 partial product on the MXU (f32 accumulation in VMEM scratch).
    acc_ref[...] += jnp.dot(x_ref[...], w1_ref[...],
                            preferred_element_type=jnp.float32)

    @pl.when(k == pl.num_programs(1) - 1)
    def _finalize():
        h = jnp.maximum(acc_ref[...] + b1_ref[...], 0.0)            # (tile_b, H)
        # fc2: output width is 1 -> skip the MXU.  W2 is a lane-major (1, H)
        # row: elementwise multiply on the VPU, lane reduction on the XLU.
        logits = jnp.sum(h * w2_ref[...], axis=-1, keepdims=True)   # (tile_b, 1)
        logits = logits + b2_ref[0]
        probs = jax.nn.sigmoid(logits)
        if lane_major_out:
            # (tile_b, 1) -> (1, tile_b): small XLU relayout so the store is a
            # dense full-lane vst instead of tile_b masked partial stores.
            o_ref[...] = probs.T.astype(o_ref.dtype)
        else:
            o_ref[...] = probs.astype(o_ref.dtype)


def greeting_classifier(x, w1, b1, w2, b2, *, compute_dtype=jnp.bfloat16):
    """Fused fc1+ReLU+fc2+Sigmoid.

    x : (B, F) activations (f32, or already in ``compute_dtype``)
    w1: (F, H)  (= torch fc1.weight.T)
    b1: (H,) or (1, H)
    w2: (H, 1), (1, H) or (H,)  (= torch fc2.weight / .T)
    b2: scalar, (1,) or (1, 1)
    Returns (B, 1) f32 probabilities.

    ``compute_dtype`` sets the fc1 MXU operand precision.  bf16 (default) is
    the fast path; pass jnp.float32 to match the torch module exactly.  Pass
    x / w1 already in ``compute_dtype`` to avoid any wrapper-side cast pass.
    """
    x = jnp.asarray(x)
    w1 = jnp.asarray(w1)
    B, F = x.shape
    F_w, H = w1.shape
    assert F_w == F, "w1 must be (input_size, hidden_size)"

    itemsize = jnp.dtype(compute_dtype).itemsize

    # ---- alignment / K-tiling of the contraction dim ------------------------
    H_pad = _round_up(H, 128)
    F128 = _round_up(F, 128)
    w1_budget = 24 << 20                       # per-buffer W1 footprint target
    if F128 * H_pad * itemsize <= w1_budget:
        tk = F128                              # fully resident W1, num_k == 1
    else:
        tk = max(128, (w1_budget // (2 * H_pad * itemsize)) // 128 * 128)
    num_k = pl.cdiv(F128, tk)
    F_pad = num_k * tk

    # ---- batch tiling --------------------------------------------------------
    if B <= 128:
        tile_b = max(8, _round_up(B, 8))       # single tile (== full lane dim)
    else:
        tile_b = min(512, _round_up(B, 128))   # lane-dense output -> %128 tiles
        while tile_b > 128 and pl.cdiv(B, tile_b) < 2:
            tile_b -= 128                      # >=2 tiles: megacore + pipelining
    num_b = pl.cdiv(B, tile_b)
    B_pad = num_b * tile_b

    # ---- cast / pad only when needed (x is the dominant streamed tensor) ----
    if x.dtype != compute_dtype:
        x = x.astype(compute_dtype)
    if w1.dtype != compute_dtype:
        w1 = w1.astype(compute_dtype)
    if B_pad != B or F_pad != F:
        x = jnp.pad(x, ((0, B_pad - B), (0, F_pad - F)))
    if F_pad != F or H_pad != H:
        w1 = jnp.pad(w1, ((0, F_pad - F), (0, H_pad - H)))

    b1 = jnp.asarray(b1, jnp.float32).reshape(1, H)
    w2 = jnp.asarray(w2, jnp.float32).reshape(1, H)    # lane-major row (VPU path)
    if H_pad != H:
        b1 = jnp.pad(b1, ((0, 0), (0, H_pad - H)))
        w2 = jnp.pad(w2, ((0, 0), (0, H_pad - H)))
    b2 = jnp.asarray(b2, jnp.float32).reshape(1)       # SMEM scalar

    # ---- VMEM budget / limit (chip-aware, with headroom) ---------------------
    vmem_bytes = (
        2 * tile_b * tk * itemsize                      # x tile, double-buffered
        + (1 if num_k == 1 else 2) * tk * H_pad * itemsize  # W1 tile(s)
        + 2 * 8 * H_pad * 4                             # b1 / W2 rows (1 buffer each)
        + tile_b * H_pad * 4                            # f32 accumulator scratch
        + 2 * 8 * tile_b * 4                            # lane-major output row
    )
    try:
        vmem_cap = int(pltpu.get_tpu_info().vmem_capacity_bytes)
    except Exception:
        vmem_cap = 64 << 20                             # v7x-safe fallback
    vmem_limit = int(min(max(int(vmem_bytes * 1.5), 16 << 20),
                         int(vmem_cap * 0.85)))

    cost = pl.CostEstimate(
        flops=int(2 * B_pad * F_pad * H_pad + 4 * B_pad * H_pad),
        transcendentals=int(B_pad),
        bytes_accessed=int(x.size * itemsize + w1.size * itemsize
                           + 2 * H_pad * 4 + 4 + B_pad * 4),
    )

    def build(lane_major_out: bool, single_buffer_consts: bool):
        const_kwargs = ({"pipeline_mode": pl.Buffered(buffer_count=1)}
                        if single_buffer_consts else {})
        # W1 is grid-invariant only when it is not K-tiled.
        w1_kwargs = const_kwargs if num_k == 1 else {}
        in_specs = [
            pl.BlockSpec((tile_b, tk), lambda i, k: (i, k)),                  # x
            pl.BlockSpec((tk, H_pad), lambda i, k: (k, 0), **w1_kwargs),      # W1
            pl.BlockSpec((1, H_pad), lambda i, k: (0, 0), **const_kwargs),    # b1
            pl.BlockSpec((1, H_pad), lambda i, k: (0, 0), **const_kwargs),    # W2
            pl.BlockSpec(memory_space=pltpu.MemorySpace.SMEM),                # b2
        ]
        if lane_major_out:
            out_shape = jax.ShapeDtypeStruct((1, B_pad), jnp.float32)
            out_spec = pl.BlockSpec((1, tile_b), lambda i, k: (0, i))
        else:
            out_shape = jax.ShapeDtypeStruct((B_pad, 1), jnp.float32)
            out_spec = pl.BlockSpec((tile_b, 1), lambda i, k: (i, 0))
        return pl.pallas_call(
            functools.partial(_greeting_kernel, lane_major_out=lane_major_out),
            out_shape=out_shape,
            grid_spec=pltpu.PrefetchScalarGridSpec(
                num_scalar_prefetch=0,
                grid=(num_b, num_k),
                in_specs=in_specs,
                out_specs=out_spec,
                scratch_shapes=[pltpu.VMEM((tile_b, H_pad), jnp.float32)],
            ),
            compiler_params=pltpu.CompilerParams(
                dimension_semantics=("parallel", "arbitrary"),
                vmem_limit_bytes=vmem_limit,
            ),
            cost_estimate=cost,
        )

    try:
        out = build(lane_major_out=True, single_buffer_consts=True)(x, w1, b1, w2, b2)
        # Padded batch rows carry garbage (bias-driven sigmoid); slice them off.
        out = out[0, :B].reshape(B, 1)
    except Exception:
        # Conservative fallback (older jax / unsupported relayout or Buffered):
        # same math, (tile_b, 1) masked-store output, default double-buffering.
        out = build(lane_major_out=False, single_buffer_consts=False)(x, w1, b1, w2, b2)
        out = out[:B]
    return out


if __name__ == "__main__":
    # Small deterministic shapes consistent with the module (hidden scaled
    # down from 1024, input_size stands in for len(vocab), 1 output).
    batch = 8
    input_size = 64
    hidden_size = 128
    output_size = 1

    key = jax.random.PRNGKey(0)
    kx, k1, kb1, k2, kb2 = jax.random.split(key, 5)

    bound1 = 1.0 / (input_size ** 0.5)
    bound2 = 1.0 / (hidden_size ** 0.5)
    x  = jax.random.normal(kx, (batch, input_size), dtype=jnp.float32)
    w1 = jax.random.uniform(k1,  (input_size, hidden_size), jnp.float32, -bound1, bound1)
    b1 = jax.random.uniform(kb1, (hidden_size,),             jnp.float32, -bound1, bound1)
    w2 = jax.random.uniform(k2,  (hidden_size, output_size), jnp.float32, -bound2, bound2)
    b2 = jax.random.uniform(kb2, (output_size,),              jnp.float32, -bound2, bound2)

    out = greeting_classifier(x, w1, b1, w2, b2)
    out = jax.block_until_ready(out)

    # Pure-JAX reference using the same bf16-rounded fc1 operands (f32 math).
    xb  = x.astype(jnp.bfloat16).astype(jnp.float32)
    w1b = w1.astype(jnp.bfloat16).astype(jnp.float32)
    h   = jnp.maximum(xb @ w1b + b1[None, :], 0.0)
    ref = jax.nn.sigmoid(h @ w2 + b2[None, :])

    assert out.shape == (batch, output_size)
    assert jnp.allclose(out, ref, atol=2e-3, rtol=2e-3), "mismatch vs reference"

    print("KERNEL_OK")
</pallas_src>

<mosaic_0001>
module attributes {stable_mosaic.version = 11 : i64} {
  func.func @_greeting_kernel(%arg0: i32, %arg1: i32, %arg2: memref<8x128xbf16, #tpu.memory_space<vmem>>, %arg3: memref<128x128xbf16, #tpu.memory_space<vmem>>, %arg4: memref<1x128xf32, #tpu.memory_space<vmem>>, %arg5: memref<1x128xf32, #tpu.memory_space<vmem>>, %arg6: memref<1xf32, #tpu.memory_space<smem>>, %arg7: memref<1x8xf32, #tpu.memory_space<vmem>>, %arg8: memref<8x128xf32, #tpu.memory_space<vmem>>) attributes {dimension_semantics = [#tpu.dimension_semantics<parallel>, #tpu.dimension_semantics<arbitrary>], iteration_bounds = array<i64: 1, 1>, scalar_prefetch = 0 : i64, scratch_operands = 1 : i64, tpu.core_type = #tpu.core_type<tc>, window_params = [{transform_indices = @transform_0, window_bounds = array<i64: 8, 128>}, {pipeline_mode = #tpu.pipeline_mode<synchronous>, transform_indices = @transform_1, window_bounds = array<i64: 128, 128>}, {pipeline_mode = #tpu.pipeline_mode<synchronous>, transform_indices = @transform_2, window_bounds = array<i64: 1, 128>}, {pipeline_mode = #tpu.pipeline_mode<synchronous>, transform_indices = @transform_3, window_bounds = array<i64: 1, 128>}, {transform_indices = @transform_4, window_bounds = array<i64: 1>}, {transform_indices = @transform_5, window_bounds = array<i64: 1, 8>}]} {
    %c0_i32 = arith.constant 0 : i32
    %0 = arith.cmpi eq, %arg1, %c0_i32 : i32
    %1 = arith.extui %0 : i1 to i32
    %c0_i32_0 = arith.constant 0 : i32
    %2 = arith.cmpi ne, %1, %c0_i32_0 : i32
    scf.if %2 {
      %cst_10 = arith.constant 0.000000e+00 : f32
      %12 = vector.broadcast %cst_10 : f32 to vector<8x128xf32>
      %c0_11 = arith.constant 0 : index
      %c0_12 = arith.constant 0 : index
      %13 = vector.load %arg8[%c0_11, %c0_12] : memref<8x128xf32, #tpu.memory_space<vmem>>, vector<8x128xf32>
      tpu.vector_store %arg8[%c0_11, %c0_12], %12 {strides = array<i32>} : memref<8x128xf32, #tpu.memory_space<vmem>>, vector<8x128xf32>,
    } else {
    }
    %c0 = arith.constant 0 : index
    %c0_1 = arith.constant 0 : index
    %3 = vector.load %arg8[%c0, %c0_1] : memref<8x128xf32, #tpu.memory_space<vmem>>, vector<8x128xf32>
    %c0_2 = arith.constant 0 : index
    %c0_3 = arith.constant 0 : index
    %4 = vector.load %arg2[%c0_2, %c0_3] : memref<8x128xbf16, #tpu.memory_space<vmem>>, vector<8x128xbf16>
    %c0_4 = arith.constant 0 : index
    %c0_5 = arith.constant 0 : index
    %5 = vector.load %arg3[%c0_4, %c0_5] : memref<128x128xbf16, #tpu.memory_space<vmem>>, vector<128x128xbf16>
    %cst = arith.constant dense<0.000000e+00> : vector<8x128xf32>
    %6 = tpu.matmul %4, %5, %cst {dimension_numbers = #tpu.dot_dimension_numbers<[1], [0], [0], [1], [0, 0, 1, 1], [], []>} : vector<8x128xbf16>, vector<128x128xbf16>, vector<8x128xf32> -> vector<8x128xf32>
    %7 = arith.addf %3, %6 : vector<8x128xf32>
    %c0_6 = arith.constant 0 : index
    %c0_7 = arith.constant 0 : index
    %8 = vector.load %arg8[%c0_6, %c0_7] : memref<8x128xf32, #tpu.memory_space<vmem>>, vector<8x128xf32>
    tpu.vector_store %arg8[%c0_6, %c0_7], %7 {strides = array<i32>} : memref<8x128xf32, #tpu.memory_space<vmem>>, vector<8x128xf32>,
    %c0_i32_8 = arith.constant 0 : i32
    %9 = arith.cmpi eq, %arg1, %c0_i32_8 : i32
    %10 = arith.extui %9 : i1 to i32
    %c0_i32_9 = arith.constant 0 : i32
    %11 = arith.cmpi ne, %10, %c0_i32_9 : i32
    scf.if %11 {
      %c0_10 = arith.constant 0 : index
      %c0_11 = arith.constant 0 : index
      %12 = vector.load %arg8[%c0_10, %c0_11] : memref<8x128xf32, #tpu.memory_space<vmem>>, vector<8x128xf32>
      %c0_12 = arith.constant 0 : index
      %c0_13 = arith.constant 0 : index
      %13 = vector.load %arg4[%c0_12, %c0_13] : memref<1x128xf32, #tpu.memory_space<vmem>>, vector<1x128xf32>
      %14 = vector.broadcast %13 : vector<1x128xf32> to vector<8x128xf32>
      %15 = arith.addf %12, %14 : vector<8x128xf32>
      %cst_14 = arith.constant 0.000000e+00 : f32
      %16 = vector.broadcast %cst_14 : f32 to vector<8x128xf32>
      %17 = arith.maximumf %15, %16 : vector<8x128xf32>
      %c0_15 = arith.constant 0 : index
      %c0_16 = arith.constant 0 : index
      %18 = vector.load %arg5[%c0_15, %c0_16] : memref<1x128xf32, #tpu.memory_space<vmem>>, vector<1x128xf32>
      %19 = vector.broadcast %18 : vector<1x128xf32> to vector<8x128xf32>
      %20 = arith.mulf %17, %19 : vector<8x128xf32>
      %cst_17 = arith.constant dense<0.000000e+00> : vector<8xf32>
      %21 = vector.multi_reduction <add>, %20, %cst_17 [1] : vector<8x128xf32> to vector<8xf32>
      %22 = vector.shape_cast %21 : vector<8xf32> to vector<8x1xf32>
      %c0_18 = arith.constant 0 : index
      %23 = memref.load %arg6[%c0_18] : memref<1xf32, #tpu.memory_space<smem>>
      %24 = vector.broadcast %23 : f32 to vector<8x1xf32>
      %25 = arith.addf %22, %24 : vector<8x1xf32>
      %26 = arith.negf %25 : vector<8x1xf32>
      %27 = math.exp %26 : vector<8x1xf32>
      %cst_19 = arith.constant 1.000000e+00 : f32
      %28 = vector.broadcast %cst_19 : f32 to vector<8x1xf32>
      %29 = arith.addf %28, %27 : vector<8x1xf32>
      %30 = arith.divf %28, %29 : vector<8x1xf32>
      %31 = tpu.transpose %30, [1, 0] : vector<8x1xf32> -> vector<1x8xf32>
      %c0_20 = arith.constant 0 : index
      %c0_21 = arith.constant 0 : index
      %32 = vector.load %arg7[%c0_20, %c0_21] : memref<1x8xf32, #tpu.memory_space<vmem>>, vector<1x8xf32>
      tpu.vector_store %arg7[%c0_20, %c0_21], %31 {strides = array<i32>} : memref<1x8xf32, #tpu.memory_space<vmem>>, vector<1x8xf32>,
    } else {
    }
    return
  }
  func.func @transform_0(%arg0: i32, %arg1: i32) -> (i32, i32) {
    %c0_i32 = arith.constant 0 : i32
    return %arg0, %arg1 : i32, i32
  }
  func.func @transform_1(%arg0: i32, %arg1: i32) -> (i32, i32) {
    %c0_i32 = arith.constant 0 : i32
    %c0_i32_0 = arith.constant 0 : i32
    return %arg1, %c0_i32 : i32, i32
  }
  func.func @transform_2(%arg0: i32, %arg1: i32) -> (i32, i32) {
    %c0_i32 = arith.constant 0 : i32
    %c0_i32_0 = arith.constant 0 : i32
    %c0_i32_1 = arith.constant 0 : i32
    return %c0_i32, %c0_i32_0 : i32, i32
  }
  func.func @transform_3(%arg0: i32, %arg1: i32) -> (i32, i32) {
    %c0_i32 = arith.constant 0 : i32
    %c0_i32_0 = arith.constant 0 : i32
    %c0_i32_1 = arith.constant 0 : i32
    return %c0_i32, %c0_i32_0 : i32, i32
  }
  func.func @transform_4(%arg0: i32, %arg1: i32) -> i32 {
    %c0_i32 = arith.constant 0 : i32
    %c0_i32_0 = arith.constant 0 : i32
    return %c0_i32 : i32
  }
  func.func @transform_5(%arg0: i32, %arg1: i32) -> (i32, i32) {
    %c0_i32 = arith.constant 0 : i32
    %c0_i32_0 = arith.constant 0 : i32
    return %c0_i32, %arg0 : i32, i32
  }
}

module attributes {stable_mosaic.version = 11 : i64} {
  func.func @_greeting_kernel(%arg0: i32, %arg1: i32, %arg2: memref<8x128xbf16, #tpu.memory_space<vmem>>, %arg3: memref<128x128xbf16, #tpu.memory_space<vmem>>, %arg4: memref<1x128xf32, #tpu.memory_space<vmem>>, %arg5: memref<1x128xf32, #tpu.memory_space<vmem>>, %arg6: memref<1xf32, #tpu.memory_space<smem>>, %arg7: memref<8x1xf32, #tpu.memory_space<vmem>>, %arg8: memref<8x128xf32, #tpu.memory_space<vmem>>) attributes {dimension_semantics = [#tpu.dimension_semantics<parallel>, #tpu.dimension_semantics<arbitrary>], iteration_bounds = array<i64: 1, 1>, scalar_prefetch = 0 : i64, scratch_operands = 1 : i64, tpu.core_type = #tpu.core_type<tc>, window_params = [{transform_indices = @transform_0, window_bounds = array<i64: 8, 128>}, {transform_indices = @transform_1, window_bounds = array<i64: 128, 128>}, {pipeline_mode = #tpu.pipeline_mode<synchronous>, transform_indices = @transform_2, window_bounds = array<i64: 1, 128>}, {pipeline_mode = #tpu.pipeline_mode<synchronous>, transform_indices = @transform_3, window_bounds = array<i64: 1, 128>}, {transform_indices = @transform_4, window_bounds = array<i64: 1>}, {transform_indices = @transform_5, window_bounds = array<i64: 8, 1>}]} {
    %c0_i32 = arith.constant 0 : i32
    %0 = arith.cmpi eq, %arg1, %c0_i32 : i32
    %1 = arith.extui %0 : i1 to i32
    %c0_i32_0 = arith.constant 0 : i32
    %2 = arith.cmpi ne, %1, %c0_i32_0 : i32
    scf.if %2 {
      %cst_10 = arith.constant 0.000000e+00 : f32
      %12 = vector.broadcast %cst_10 : f32 to vector<8x128xf32>
      %c0_11 = arith.constant 0 : index
      %c0_12 = arith.constant 0 : index
      %13 = vector.load %arg8[%c0_11, %c0_12] : memref<8x128xf32, #tpu.memory_space<vmem>>, vector<8x128xf32>
      tpu.vector_store %arg8[%c0_11, %c0_12], %12 {strides = array<i32>} : memref<8x128xf32, #tpu.memory_space<vmem>>, vector<8x128xf32>,
    } else {
    }
    %c0 = arith.constant 0 : index
    %c0_1 = arith.constant 0 : index
    %3 = vector.load %arg8[%c0, %c0_1] : memref<8x128xf32, #tpu.memory_space<vmem>>, vector<8x128xf32>
    %c0_2 = arith.constant 0 : index
    %c0_3 = arith.constant 0 : index
    %4 = vector.load %arg2[%c0_2, %c0_3] : memref<8x128xbf16, #tpu.memory_space<vmem>>, vector<8x128xbf16>
    %c0_4 = arith.constant 0 : index
    %c0_5 = arith.constant 0 : index
    %5 = vector.load %arg3[%c0_4, %c0_5] : memref<128x128xbf16, #tpu.memory_space<vmem>>, vector<128x128xbf16>
    %cst = arith.constant dense<0.000000e+00> : vector<8x128xf32>
    %6 = tpu.matmul %4, %5, %cst {dimension_numbers = #tpu.dot_dimension_numbers<[1], [0], [0], [1], [0, 0, 1, 1], [], []>} : vector<8x128xbf16>, vector<128x128xbf16>, vector<8x128xf32> -> vector<8x128xf32>
    %7 = arith.addf %3, %6 : vector<8x128xf32>
    %c0_6 = arith.constant 0 : index
    %c0_7 = arith.constant 0 : index
    %8 = vector.load %arg8[%c0_6, %c0_7] : memref<8x128xf32, #tpu.memory_space<vmem>>, vector<8x128xf32>
    tpu.vector_store %arg8[%c0_6, %c0_7], %7 {strides = array<i32>} : memref<8x128xf32, #tpu.memory_space<vmem>>, vector<8x128xf32>,
    %c0_i32_8 = arith.constant 0 : i32
    %9 = arith.cmpi eq, %arg1, %c0_i32_8 : i32
    %10 = arith.extui %9 : i1 to i32
    %c0_i32_9 = arith.constant 0 : i32
    %11 = arith.cmpi ne, %10, %c0_i32_9 : i32
    scf.if %11 {
      %c0_10 = arith.constant 0 : index
      %c0_11 = arith.constant 0 : index
      %12 = vector.load %arg8[%c0_10, %c0_11] : memref<8x128xf32, #tpu.memory_space<vmem>>, vector<8x128xf32>
      %c0_12 = arith.constant 0 : index
      %c0_13 = arith.constant 0 : index
      %13 = vector.load %arg4[%c0_12, %c0_13] : memref<1x128xf32, #tpu.memory_space<vmem>>, vector<1x128xf32>
      %14 = vector.broadcast %13 : vector<1x128xf32> to vector<8x128xf32>
      %15 = arith.addf %12, %14 : vector<8x128xf32>
      %cst_14 = arith.constant 0.000000e+00 : f32
      %16 = vector.broadcast %cst_14 : f32 to vector<8x128xf32>
      %17 = arith.maximumf %15, %16 : vector<8x128xf32>
      %c0_15 = arith.constant 0 : index
      %c0_16 = arith.constant 0 : index
      %18 = vector.load %arg5[%c0_15, %c0_16] : memref<1x128xf32, #tpu.memory_space<vmem>>, vector<1x128xf32>
      %19 = vector.broadcast %18 : vector<1x128xf32> to vector<8x128xf32>
      %20 = arith.mulf %17, %19 : vector<8x128xf32>
      %cst_17 = arith.constant dense<0.000000e+00> : vector<8xf32>
      %21 = vector.multi_reduction <add>, %20, %cst_17 [1] : vector<8x128xf32> to vector<8xf32>
      %22 = vector.shape_cast %21 : vector<8xf32> to vector<8x1xf32>
      %c0_18 = arith.constant 0 : index
      %23 = memref.load %arg6[%c0_18] : memref<1xf32, #tpu.memory_space<smem>>
      %24 = vector.broadcast %23 : f32 to vector<8x1xf32>
      %25 = arith.addf %22, %24 : vector<8x1xf32>
      %26 = arith.negf %25 : vector<8x1xf32>
      %27 = math.exp %26 : vector<8x1xf32>
      %cst_19 = arith.constant 1.000000e+00 : f32
      %28 = vector.broadcast %cst_19 : f32 to vector<8x1xf32>
      %29 = arith.addf %28, %27 : vector<8x1xf32>
      %30 = arith.divf %28, %29 : vector<8x1xf32>
      %c0_20 = arith.constant 0 : index
      %c0_21 = arith.constant 0 : index
      %31 = vector.load %arg7[%c0_20, %c0_21] : memref<8x1xf32, #tpu.memory_space<vmem>>, vector<8x1xf32>
      tpu.vector_store %arg7[%c0_20, %c0_21], %30 {strides = array<i32>} : memref<8x1xf32, #tpu.memory_space<vmem>>, vector<8x1xf32>,
    } else {
    }
    return
  }
  func.func @transform_0(%arg0: i32, %arg1: i32) -> (i32, i32) {
    %c0_i32 = arith.constant 0 : i32
    return %arg0, %arg1 : i32, i32
  }
  func.func @transform_1(%arg0: i32, %arg1: i32) -> (i32, i32) {
    %c0_i32 = arith.constant 0 : i32
    %c0_i32_0 = arith.constant 0 : i32
    return %arg1, %c0_i32 : i32, i32
  }
  func.func @transform_2(%arg0: i32, %arg1: i32) -> (i32, i32) {
    %c0_i32 = arith.constant 0 : i32
    %c0_i32_0 = arith.constant 0 : i32
    %c0_i32_1 = arith.constant 0 : i32
    return %c0_i32, %c0_i32_0 : i32, i32
  }
  func.func @transform_3(%arg0: i32, %arg1: i32) -> (i32, i32) {
    %c0_i32 = arith.constant 0 : i32
    %c0_i32_0 = arith.constant 0 : i32
    %c0_i32_1 = arith.constant 0 : i32
    return %c0_i32, %c0_i32_0 : i32, i32
  }
  func.func @transform_4(%arg0: i32, %arg1: i32) -> i32 {
    %c0_i32 = arith.constant 0 : i32
    %c0_i32_0 = arith.constant 0 : i32
    return %c0_i32 : i32
  }
  func.func @transform_5(%arg0: i32, %arg1: i32) -> (i32, i32) {
    %c0_i32 = arith.constant 0 : i32
    %c0_i32_0 = arith.constant 0 : i32
    return %arg0, %c0_i32 : i32, i32
  }
}

</mosaic_0001>

<bundles_post_ra>
// kernel: tpu_custom_call.1
= control target key start
LH: loop header
LB: loop body
LE: loop exit
PB: predicated region body
PF: predicated region fallthrough
CT: control target
= control target key end

     0   :  { %11 = vsyncpa [#allocation5], 0  ;;  %s413_s0 = inlined_call_operand.hbm [shape: bf16[8,128], index: 0, kind: input, shape index: {}]   ;;  %s414_s1 = inlined_call_operand.hbm [shape: bf16[128,128], index: 1, kind: input, shape index: {}]   ;;  %s415_s2 = inlined_call_operand.vmem [shape: f32[1,128], index: 2, kind: input, shape index: {}]   ;;  %s416_s3 = inlined_call_operand.vmem [shape: f32[1,128], index: 3, kind: input, shape index: {}]   ;;  %s417_s4 = inlined_call_operand.<no memory space> [shape: f32[1], index: 4, kind: input, shape index: {}]   ;;  %s418_s5 = inlined_call_operand.hbm [shape: f32[1,8], index: 5, kind: output, shape index: {}]  }
   0x1   :  { %12 = vsyncpa [#allocation8], 0 }
   0x2   :  { %13 = vsyncpa [#allocation6], 0  ;;  %s19_s20 = sshll.u32 %s413_s0, 4  ;;  %s360_s21 = smov [#allocation4]   ;;  %s20_s20 = int_to_ptr.hbm [resolvable:$true] %s19_s20 }
   0x3   :  { %s21_s22 = sshll.u32 %s360_s21, 4  ;;  %s29_s25 = sshll.u32 %s414_s1, 4  ;;  %s22_s22 = int_to_ptr.vmem [resolvable:$true] %s21_s22  ;;  %s30_s25 = int_to_ptr.hbm [resolvable:$true] %s29_s25 }
   0x4   :  { %24 = dma.hbm_to_vmem [thread:$0]  %s20_s20, 64, %s22_s22, [#allocation5]  }
   0x5   :  { %s361_s26 = smov [#allocation7]   ;;  %s362_s28 = smov 64  }
   0x6   :  { %s31_s27 = sshll.u32 %s361_s26, 4  ;;  %s363_s29 = smov 4   ;;  %s32_s27 = int_to_ptr.vmem [resolvable:$true] %s31_s27 }
   0x7   :  { %37 = dma.hbm_to_vmem [thread:$0]  %s30_s25, 1024, %s32_s27, [#allocation8], %s362_s28, %s362_s28, %s363_s29  }
   0x8   :  { %354 = dma.done.wait [#allocation5], 64  }
   0x9   :  { %355 = vsyncadd [#allocation5], 4294967232 }
   0xa   :  { %356 = dma.done.wait [#allocation8], 1024  }
   0xb   :  { %357 = vsyncadd [#allocation8], 4294966272  ;;  %v269_v0 = vld [vmem:[#allocation7 + $0x38] sm:$0xff]  ;;  %v268_v1 = vld [vmem:[#allocation7 + $0x30] sm:$0xff]  ;;  %v156_v16 = vstv %s417_s4  ;;  %s218_s10 = sshll.u32 %s418_s5, 4  ;;  %vm209_vm4 = vcmask 57344   ;;  %s219_s10 = int_to_ptr.hbm [resolvable:$true] %s218_s10 }
   0xc   :  { %123 = vmatpush.bf16.msra.mxu0 %v269_v0  ;;  %v267_v2 = vld [vmem:[#allocation7 + $0x28] sm:$0xff]  ;;  %v266_v3 = vld [vmem:[#allocation7 + $0x20] sm:$0xff]  ;;  %v265_v4 = vld [vmem:[#allocation7 + $0x18] sm:$0xff] }
   0xd   :  { %v264_v5 = vld [vmem:[#allocation7 + $0x10] sm:$0xff]  ;;  %v263_v6 = vld [vmem:[#allocation7 + $0x8] sm:$0xff]  ;;  %v262_v7 = vld [vmem:[#allocation7] sm:$0xff] }
   0xe   :  { %v58_v8 = vld [vmem:[#allocation4] sm:$0xf] }
   0xf   :  { %v276_v9 = vld [vmem:[%s415_s2] ss:$0 sm:$0xff]  ;;  %s364_s2 = smov [#allocation9]  }
  0x10   :  { %124 = vmatpush.bf16.msra.mxu0 %v268_v1  ;;  %v277_v12 = vld [vmem:[%s416_s3] ss:$0 sm:$0xff]  ;;  %s216_s3 = sshll.u32 %s364_s2, 4  ;;  %s217_s3 = int_to_ptr.vmem [resolvable:$true] %s216_s3 }
  0x14   :  { %125 = vmatpush.bf16.msra.mxu0 %v267_v2 }
  0x18   :  { %126 = vmatpush.bf16.msra.mxu0 %v266_v3 }
  0x1c   :  { %127 = vmatpush.bf16.msra.mxu0 %v265_v4 }
  0x20   :  { %128 = vmatpush.bf16.msra.mxu0 %v264_v5 }
  0x24   :  { %129 = vmatpush.bf16.msra.mxu0 %v263_v6 }
  0x28   :  { %130 = vmatpush.bf16.msra.mxu0 %v262_v7 }
  0x2b   :  { %131 = vmatmul.bf16.vlgmr.msra.gmra.mxu0 %v58_v8 }
  0xa8   :  { %v132_v10 = vpop.f32.mrf.mxu0 }
  0xa9   :  { %v146_v11 = vadd.f32 %v276_v9, %v132_v10 }
  0xab   :  { %v147_v13 = vmax.f32 %v146_v11, 0.0 }
  0xad   :  { %v152_v14 = vmul.f32 %v277_v12, %v147_v13 }
  0xaf   :  { %153 = vadd.xlane.f32.xlu0 %v152_v14 }
  0xb0   :  { %v134_v15 = vpop.f32.mrf.mxu0 }
 0x122   :  { %v154_v17 = vpop.xlane.xlu0 %153 }
 0x123   :  { %v157_v18 = vadd.f32 %v156_v16, %v154_v17 }
 0x125   :  { %v261_v19 = vmul.f32 -1.442695, %v157_v18 }
 0x127   :  { %278 = vpow2.f32 %v261_v19 }
 0x12d   :  { %v279_v20 = vpop.eup %278 }
 0x12e   :  { %v161_v21 = vadd.f32 1.0, %v279_v20 }
 0x130   :  { %280 = vrcp.f32 %v161_v21  ;;  %v173_v25 = vand.u32 2147483648, %v161_v21  ;;  %v171_v27 = vand.u32 2147483647, %v161_v21  ;;  %vm167_vm1 = vweird.f32 %v161_v21 }
 0x132   :  { %v174_v29 = vor.u32 1.1754944e-38, %v173_v25  ;;  %vm172_vm3 = vcmp.eq.f32.partialorder %v171_v27, 8.507059e+37 }
 0x136   :  { %v281_v22 = vpop.eup %280 }
 0x137   :  { %v163_v23 = vmul.f32 %v281_v22, %v161_v21  ;;  %vm168_vm0 = vweird.f32 %v281_v22 }
 0x138   :  { %vm169_vm2 = vmor %vm167_vm1, %vm168_vm0 }
 0x139   :  { %v164_v24 = vsub.f32 1.0, %v163_v23 }
 0x13b   :  { %v165_v26 = vmul.f32 %v281_v22, %v164_v24 }
 0x13d   :  { %v166_v28 = vadd.f32 %v281_v22, %v165_v26 }
 0x13f   :  { %v170_v30 = vsel %vm169_vm2, %v281_v22, %v166_v28 }
 0x140   :  { %v175_v31 = vsel %vm172_vm3, %v174_v29, %v170_v30 }
 0x141   :  { %177 = vxpose.xlu0.b32.start.end [1/1] (short) (narrow) %v175_v31, 8 }
 0x1e5   :  { %v193_v32 = vpop.trf.xlu0 }
 0x1e6   :  { %210 = vst.msk [vmem:[#allocation9] sm:$0x1] %vm209_vm4, %v193_v32 }
 0x1e7   :  { %221 = dma.vmem_to_hbm [thread:$0]  %s217_s3, 16, %s219_s10, [#allocation6]  }
 0x1e8   :  { %358 = dma.done.wait [#allocation6], 16  }
 0x1e9   :  { %359 = vsyncadd [#allocation6], 4294967280 }
 0x1ea   :  { %226 = vsyncpa [#allocation5], 1 }
 0x1eb   :  { %227 = vsyncpa [#allocation8], 1 }
 0x1ec   :  { %228 = vsyncpa [#allocation6], 1 }

// kernel: tpu_custom_call.1
= control target key start
LH: loop header
LB: loop body
LE: loop exit
PB: predicated region body
PF: predicated region fallthrough
CT: control target
= control target key end

     0   :  { %11 = vsyncpa [#allocation5], 0  ;;  %s339_s0 = inlined_call_operand.hbm [shape: bf16[8,128], index: 0, kind: input, shape index: {}]   ;;  %s340_s1 = inlined_call_operand.hbm [shape: bf16[128,128], index: 1, kind: input, shape index: {}]   ;;  %s341_s2 = inlined_call_operand.vmem [shape: f32[1,128], index: 2, kind: input, shape index: {}]   ;;  %s342_s3 = inlined_call_operand.vmem [shape: f32[1,128], index: 3, kind: input, shape index: {}]   ;;  %s343_s4 = inlined_call_operand.<no memory space> [shape: f32[1], index: 4, kind: input, shape index: {}]   ;;  %s344_s5 = inlined_call_operand.vmem [shape: f32[8,1], index: 5, kind: output, shape index: {}]  }
   0x1   :  { %s18_s20 = sshll.u32 %s339_s0, 4  ;;  %s19_s20 = int_to_ptr.hbm [resolvable:$true] %s18_s20 }
   0x2   :  { %12 = vsyncpa [#allocation7], 0  ;;  %s287_s21 = smov [#allocation4]   ;;  %s28_s25 = sshll.u32 %s340_s1, 4  ;;  %s29_s25 = int_to_ptr.hbm [resolvable:$true] %s28_s25 }
   0x3   :  { %s20_s22 = sshll.u32 %s287_s21, 4  ;;  %s288_s26 = smov [#allocation6]   ;;  %s21_s22 = int_to_ptr.vmem [resolvable:$true] %s20_s22 }
   0x4   :  { %23 = dma.hbm_to_vmem [thread:$0]  %s19_s20, 64, %s21_s22, [#allocation5]  }
   0x5   :  { %s30_s27 = sshll.u32 %s288_s26, 4  ;;  %s289_s28 = smov 64   ;;  %s31_s27 = int_to_ptr.vmem [resolvable:$true] %s30_s27 }
   0x6   :  { %s290_s29 = smov 4  }
   0x7   :  { %36 = dma.hbm_to_vmem [thread:$0]  %s29_s25, 1024, %s31_s27, [#allocation7], %s289_s28, %s289_s28, %s290_s29  }
   0x8   :  { %283 = dma.done.wait [#allocation5], 64  }
   0x9   :  { %284 = vsyncadd [#allocation5], 4294967232 }
   0xa   :  { %285 = dma.done.wait [#allocation7], 1024  }
   0xb   :  { %286 = vsyncadd [#allocation7], 4294966272  ;;  %v224_v0 = vld [vmem:[#allocation6 + $0x38] sm:$0xff]  ;;  %v223_v1 = vld [vmem:[#allocation6 + $0x30] sm:$0xff]  ;;  %v155_v16 = vstv %s343_s4  ;;  %vm176_vm3 = vcmask 7168  }
   0xc   :  { %122 = vmatpush.bf16.msra.mxu0 %v224_v0  ;;  %v222_v2 = vld [vmem:[#allocation6 + $0x28] sm:$0xff]  ;;  %v221_v3 = vld [vmem:[#allocation6 + $0x20] sm:$0xff]  ;;  %v220_v4 = vld [vmem:[#allocation6 + $0x18] sm:$0xff] }
   0xd   :  { %v219_v5 = vld [vmem:[#allocation6 + $0x10] sm:$0xff]  ;;  %v218_v6 = vld [vmem:[#allocation6 + $0x8] sm:$0xff]  ;;  %v217_v7 = vld [vmem:[#allocation6] sm:$0xff] }
   0xe   :  { %v57_v8 = vld [vmem:[#allocation4] sm:$0xf] }
   0xf   :  { %v229_v9 = vld [vmem:[%s341_s2] ss:$0 sm:$0xff] }
  0x10   :  { %123 = vmatpush.bf16.msra.mxu0 %v223_v1  ;;  %v230_v12 = vld [vmem:[%s342_s3] ss:$0 sm:$0xff] }
  0x14   :  { %124 = vmatpush.bf16.msra.mxu0 %v222_v2 }
  0x18   :  { %125 = vmatpush.bf16.msra.mxu0 %v221_v3 }
  0x1c   :  { %126 = vmatpush.bf16.msra.mxu0 %v220_v4 }
  0x20   :  { %127 = vmatpush.bf16.msra.mxu0 %v219_v5 }
  0x24   :  { %128 = vmatpush.bf16.msra.mxu0 %v218_v6 }
  0x28   :  { %129 = vmatpush.bf16.msra.mxu0 %v217_v7 }
  0x2b   :  { %130 = vmatmul.bf16.vlgmr.msra.gmra.mxu0 %v57_v8 }
  0xa8   :  { %v131_v10 = vpop.f32.mrf.mxu0 }
  0xa9   :  { %v145_v11 = vadd.f32 %v229_v9, %v131_v10 }
  0xab   :  { %v146_v13 = vmax.f32 %v145_v11, 0.0 }
  0xad   :  { %v151_v14 = vmul.f32 %v230_v12, %v146_v13 }
  0xaf   :  { %152 = vadd.xlane.f32.xlu0 %v151_v14 }
  0xb0   :  { %v133_v15 = vpop.f32.mrf.mxu0 }
 0x122   :  { %v153_v17 = vpop.xlane.xlu0 %152 }
 0x123   :  { %v156_v18 = vadd.f32 %v155_v16, %v153_v17 }
 0x125   :  { %v216_v19 = vmul.f32 -1.442695, %v156_v18 }
 0x127   :  { %231 = vpow2.f32 %v216_v19 }
 0x12d   :  { %v232_v20 = vpop.eup %231 }
 0x12e   :  { %v160_v21 = vadd.f32 1.0, %v232_v20 }
 0x130   :  { %233 = vrcp.f32 %v160_v21  ;;  %v172_v25 = vand.u32 2147483648, %v160_v21  ;;  %v170_v27 = vand.u32 2147483647, %v160_v21  ;;  %vm166_vm1 = vweird.f32 %v160_v21 }
 0x132   :  { %v173_v29 = vor.u32 1.1754944e-38, %v172_v25  ;;  %vm171_vm4 = vcmp.eq.f32.partialorder %v170_v27, 8.507059e+37 }
 0x136   :  { %v234_v22 = vpop.eup %233 }
 0x137   :  { %v162_v23 = vmul.f32 %v234_v22, %v160_v21  ;;  %vm167_vm0 = vweird.f32 %v234_v22 }
 0x138   :  { %vm168_vm2 = vmor %vm166_vm1, %vm167_vm0 }
 0x139   :  { %v163_v24 = vsub.f32 1.0, %v162_v23 }
 0x13b   :  { %v164_v26 = vmul.f32 %v234_v22, %v163_v24 }
 0x13d   :  { %v165_v28 = vadd.f32 %v234_v22, %v164_v26 }
 0x13f   :  { %v169_v30 = vsel %vm168_vm2, %v234_v22, %v165_v28 }
 0x140   :  { %v174_v31 = vsel %vm171_vm4, %v173_v29, %v169_v30 }
 0x141   :  { %177 = vst.msk [vmem:[%s344_s5] sm:$0xff] %vm176_vm3, %v174_v31 }
 0x142   :  { %182 = vsyncpa [#allocation5], 1 }
 0x143   :  { %183 = vsyncpa [#allocation7], 1 }

</bundles_post_ra>
